<compile_context>
chip_gen: v5e
topology: v5e:2x2
jax: 0.10.0
libtpu: 0.0.40
codegen_flags: <defaults>
</compile_context>

<pallas_src>
import jax
import jax.numpy as jnp
from jax.experimental import pallas as pl
from jax.experimental.pallas import tpu as pltpu


def linear_kernel(params_ref, xT_ref, o_ref):
    # params_ref: SMEM (4,)  = [w0, w1, w2, b]
    # xT_ref:     VMEM (3, B)  -- batch on the lane axis (lane-dense loads)
    # o_ref:      VMEM (1, B)  -- lane-dense output store
    w0 = params_ref[0]
    w1 = params_ref[1]
    w2 = params_ref[2]
    b = params_ref[3]
    x = xT_ref[...]                                  # (3, B) f32
    y = x[0:1, :] * w0 + x[1:2, :] * w1 + x[2:3, :] * w2 + b   # (1, B), pure VPU
    o_ref[...] = y.astype(o_ref.dtype)


def simple_model_forward(x, weight, bias):
    """x: (B, 3) f32, weight: (1, 3) f32, bias: (1,) f32 -> (B, 1) f32."""
    B, in_features = x.shape
    out_features = weight.shape[0]
    assert in_features == 3 and out_features == 1

    # Layout plumbing in the wrapper (XLA-side, cheap): batch onto lanes.
    xT = jnp.transpose(x)                                        # (3, B)
    params = jnp.concatenate(
        [weight.reshape(-1), bias.reshape(-1)]
    ).astype(jnp.float32)                                        # (4,)

    yT = pl.pallas_call(
        linear_kernel,
        out_shape=jax.ShapeDtypeStruct((out_features, B), x.dtype),
        in_specs=[
            pl.BlockSpec(memory_space=pltpu.MemorySpace.SMEM),   # params (scalars)
            pl.BlockSpec(memory_space=pltpu.MemorySpace.VMEM),   # xT (whole array)
        ],
        out_specs=pl.BlockSpec(memory_space=pltpu.MemorySpace.VMEM),
    )(params, xT)                                                # (1, B)

    return jnp.transpose(yT)                                     # (B, 1)


if __name__ == "__main__":
    key = jax.random.PRNGKey(0)
    kx, kw, kb = jax.random.split(key, 3)

    B, in_features, out_features = 8, 3, 1

    # Deterministic parameter init (shapes from nn.Linear(3, 1)).
    bound = 1.0 / jnp.sqrt(in_features)
    weight = jax.random.uniform(kw, (out_features, in_features),
                                minval=-bound, maxval=bound, dtype=jnp.float32)
    bias = jax.random.uniform(kb, (out_features,),
                              minval=-bound, maxval=bound, dtype=jnp.float32)

    x = jax.random.normal(kx, (B, in_features), dtype=jnp.float32)

    y = simple_model_forward(x, weight, bias)
    jax.block_until_ready(y)

    # Reference check in plain JAX.
    y_ref = x @ weight.T + bias
    assert y.shape == (B, out_features)
    assert jnp.allclose(y, y_ref, atol=1e-5, rtol=1e-5)

    print("KERNEL_OK")
</pallas_src>

<mosaic_0001>
module attributes {stable_mosaic.version = 11 : i64} {
  func.func @linear_kernel(%arg0: memref<4xf32, #tpu.memory_space<smem>>, %arg1: memref<3x8xf32, #tpu.memory_space<vmem>>, %arg2: memref<1x8xf32, #tpu.memory_space<vmem>>) attributes {dimension_semantics = [], scalar_prefetch = 0 : i64, scratch_operands = 0 : i64, tpu.core_type = #tpu.core_type<tc>} {
    %c0 = arith.constant 0 : index
    %0 = memref.load %arg0[%c0] : memref<4xf32, #tpu.memory_space<smem>>
    %c1 = arith.constant 1 : index
    %1 = memref.load %arg0[%c1] : memref<4xf32, #tpu.memory_space<smem>>
    %c2 = arith.constant 2 : index
    %2 = memref.load %arg0[%c2] : memref<4xf32, #tpu.memory_space<smem>>
    %c3 = arith.constant 3 : index
    %3 = memref.load %arg0[%c3] : memref<4xf32, #tpu.memory_space<smem>>
    %c0_0 = arith.constant 0 : index
    %c0_1 = arith.constant 0 : index
    %4 = vector.load %arg1[%c0_0, %c0_1] : memref<3x8xf32, #tpu.memory_space<vmem>>, vector<3x8xf32>
    %5 = vector.extract_strided_slice %4 {offsets = [0, 0], sizes = [1, 8], strides = [1, 1]} : vector<3x8xf32> to vector<1x8xf32>
    %6 = vector.broadcast %0 : f32 to vector<1x8xf32>
    %7 = arith.mulf %5, %6 : vector<1x8xf32>
    %8 = vector.extract_strided_slice %4 {offsets = [1, 0], sizes = [1, 8], strides = [1, 1]} : vector<3x8xf32> to vector<1x8xf32>
    %9 = vector.broadcast %1 : f32 to vector<1x8xf32>
    %10 = arith.mulf %8, %9 : vector<1x8xf32>
    %11 = arith.addf %7, %10 : vector<1x8xf32>
    %12 = vector.extract_strided_slice %4 {offsets = [2, 0], sizes = [1, 8], strides = [1, 1]} : vector<3x8xf32> to vector<1x8xf32>
    %13 = vector.broadcast %2 : f32 to vector<1x8xf32>
    %14 = arith.mulf %12, %13 : vector<1x8xf32>
    %15 = arith.addf %11, %14 : vector<1x8xf32>
    %16 = vector.broadcast %3 : f32 to vector<1x8xf32>
    %17 = arith.addf %15, %16 : vector<1x8xf32>
    %c0_2 = arith.constant 0 : index
    %c0_3 = arith.constant 0 : index
    %18 = vector.load %arg2[%c0_2, %c0_3] : memref<1x8xf32, #tpu.memory_space<vmem>>, vector<1x8xf32>
    tpu.vector_store %arg2[%c0_2, %c0_3], %17 {strides = array<i32>} : memref<1x8xf32, #tpu.memory_space<vmem>>, vector<1x8xf32>,
    return
  }
}

</mosaic_0001>

<bundles_post_ra>
// kernel: tpu_custom_call.1
= control target key start
LH: loop header
LB: loop body
LE: loop exit
PB: predicated region body
PF: predicated region fallthrough
CT: control target
= control target key end

     0   :  { %7 = vsyncpa [#allocation5], 0  ;;  %s179_s0 = inlined_call_operand.hbm [shape: f32[4], index: 0, kind: input, shape index: {}]   ;;  %s180_s1 = inlined_call_operand.hbm [shape: f32[3,8], index: 1, kind: input, shape index: {}]   ;;  %s181_s2 = inlined_call_operand.hbm [shape: f32[1,8], index: 2, kind: output, shape index: {}]  }
   0x1   :  { %8 = vsyncpa [#allocation3], 0 }
   0x2   :  { %9 = vsyncpa [#allocation4], 0  ;;  %s15_s11 = sshll.u32 %s179_s0, 4  ;;  %s24_s14 = sshll.u32 %s180_s1, 4  ;;  %s16_s11 = int_to_ptr.hbm [resolvable:$true] %s15_s11  ;;  %s25_s14 = int_to_ptr.hbm [resolvable:$true] %s24_s14 }
   0x3   :  { %s152_s15 = smov [#allocation2]   ;;  %s153_s16 = smov [#allocation6]  }
   0x4   :  { %18 = dma.hbm_to_smem %s16_s11, 16, %s152_s15, [#allocation5]  }
   0x5   :  { %s26_s17 = sshll.u32 %s153_s16, 4  ;;  %s27_s17 = int_to_ptr.vmem [resolvable:$true] %s26_s17 }
   0x6   :  { %29 = dma.hbm_to_vmem [thread:$0]  %s25_s14, 64, %s27_s17, [#allocation3]  }
   0x7   :  { %146 = dma.done.wait [#allocation5], 16  }
   0x8   :  { %147 = vsyncadd [#allocation5], 4294967280 }
   0x9   :  { %148 = dma.done.wait [#allocation3], 64  }
   0xa   :  { %149 = vsyncadd [#allocation3], 4294967232 }
   0xb   :  { %38 = sfence }
   0xc   :  { %s39_s18 = sld [smem:[#allocation2]]  ;;  %v43_v0 = vld [vmem:[#allocation6] sm:$0x7]  ;;  %s154_s1 = smov [#allocation7]   ;;  %vm60_vm0 = vcmask 57344  }
   0xd   :  { %s80_s19 = sld [smem:[#allocation2 + $0x1]]  ;;  %s67_s21 = sshll.u32 %s154_s1, 4  ;;  %s68_s21 = int_to_ptr.vmem [resolvable:$true] %s67_s21 }
   0xe   :  { %s81_s0 = sld [smem:[#allocation2 + $0x2]]  ;;  %s69_s24 = sshll.u32 %s181_s2, 4  ;;  %s70_s24 = int_to_ptr.hbm [resolvable:$true] %s69_s24 }
   0xf   :  { %s82_s20 = sld [smem:[#allocation2 + $0x3]] }
  0x12   :  { %v44_v1 = vstv %s39_s18 }
  0x13   :  { %v46_v2 = vstv %s80_s19  ;;  %v45_v3 = vmul.f32 %v44_v1, %v43_v0 }
  0x14   :  { %v47_v4 = vmul.f32 %v46_v2, %v43_v0  ;;  %v52_v5 = vstv %s81_s0 }
  0x15   :  { %v53_v6 = vmul.f32 %v52_v5, %v43_v0  ;;  %v58_v10 = vstv %s82_s20 }
  0x16   :  { %v49_v7 = vrot.slane %v47_v4, 1 }
  0x17   :  { %v55_v8 = vrot.slane %v53_v6, 2 }
  0x18   :  { %v51_v9 = vadd.f32 %v49_v7, %v45_v3 }
  0x1a   :  { %v57_v11 = vadd.f32 %v55_v8, %v51_v9 }
  0x1c   :  { %v59_v12 = vadd.f32 %v58_v10, %v57_v11 }
  0x1e   :  { %61 = vst.msk [vmem:[#allocation7] sm:$0x1] %vm60_vm0, %v59_v12 }
  0x1f   :  { %72 = dma.vmem_to_hbm [thread:$0]  %s68_s21, 16, %s70_s24, [#allocation4]  }
  0x20   :  { %150 = dma.done.wait [#allocation4], 16  }
  0x21   :  { %151 = vsyncadd [#allocation4], 4294967280 }
  0x22   :  { %77 = vsyncpa [#allocation3], 1 }
  0x23   :  { %78 = vsyncpa [#allocation4], 1 }
  0x24   :  { %79 = vsyncpa [#allocation5], 1 }

</bundles_post_ra>
